<compile_context>
chip_gen: v7x
topology: tpu7x:2x2x1
jax: 0.10.0
libtpu: 0.0.40
codegen_flags: <defaults>
</compile_context>

<pallas_src>
import math
import functools

import jax
import jax.numpy as jnp
from jax.experimental import pallas as pl
from jax.experimental.pallas import tpu as pltpu


def _round_up(v: int, m: int) -> int:
    return (v + m - 1) // m * m


def _device_kind() -> str:
    try:
        return jax.devices()[0].device_kind.lower()
    except Exception:
        return ""


def _vmem_budget_bytes() -> int:
    kind = _device_kind()
    if ("v5" in kind) or ("v6" in kind):
        return 96 << 20          # 128 MiB physical VMEM -> generous scoped budget
    return 48 << 20              # v7x has 64 MiB physical; also the safe default


def _multi_tensorcore() -> bool:
    return "v7" in _device_kind()


def _vmem_limit(need_bytes: int, budget: int) -> int:
    return int(min(budget, max(32 << 20, need_bytes * 3 // 2 + (1 << 20))))


def _pad_to(a, shape):
    pads = tuple((0, t - s) for s, t in zip(a.shape, shape))
    if all(p == (0, 0) for p in pads):
        return a
    return jnp.pad(a, pads)


def _cast_pad(a, dtype, shape):
    if a.dtype != dtype:
        a = a.astype(dtype)
    return _pad_to(a, shape)


def prepare_adj(adj, *, compute_dtype=jnp.float32):
    """Cast + lane-pad (to a multiple of 128) the adjacency once, outside the layer.

    Net reuses the same normalized adjacency S for gc1 and gc2; doing the pad/cast
    here avoids an extra HBM read+write of the dominant N^2 stream on every layer
    call.  graph_convolution() accepts either the raw (.., N, N) adjacency or this
    pre-padded (zero-padded) version.
    """
    n = adj.shape[-1]
    n_p = _round_up(n, 128)
    if adj.dtype != compute_dtype:
        adj = adj.astype(compute_dtype)
    if n_p != n:
        pad = [(0, 0)] * (adj.ndim - 2) + [(0, n_p - n), (0, n_p - n)]
        adj = jnp.pad(adj, pad)
    return adj


def _prep_adj(adj, n_p, compute_dtype):
    """Bring adj to (.., n_p, n_p); a zero-padded pre-prepared adj is reused as-is."""
    if adj.dtype != compute_dtype:
        adj = adj.astype(compute_dtype)
    m = adj.shape[-1]
    if m == n_p:
        return adj
    if m > n_p:
        # Pre-padded region is zeros, so dropping the excess is exact.
        return adj[..., :n_p, :n_p]
    pad = [(0, 0)] * (adj.ndim - 2) + [(0, n_p - m), (0, n_p - m)]
    return jnp.pad(adj, pad)


# --------------------------------------------------------------------------- kernels

def _gcn_fused_kernel(x_ref, adj_ref, w_ref, b_ref, o_ref):
    """Small-graph path: one shot per (batch, row tile); whole graph resident in VMEM.

    x_ref:   (1, N_p, Fin_p)   all node features (compute dtype)
    adj_ref: (1, TM, N_p)      adjacency row tile
    w_ref:   (Fin_p, Fout_p)   dense weight (block index constant -> resident)
    b_ref:   (1, 1, Fout_p)    f32 bias (zeros when the layer has no bias)
    o_ref:   (1, TM, Fout_p)   output row tile (lane-dense store)
    """
    support = jnp.dot(x_ref[0], w_ref[...], preferred_element_type=jnp.float32)
    support = support.astype(x_ref.dtype)
    out = jnp.dot(adj_ref[0], support, preferred_element_type=jnp.float32)
    o_ref[0] = (out + b_ref[0]).astype(o_ref.dtype)


def _support_kernel(x_ref, w_ref, o_ref, acc_ref):
    """Large-graph stage 1: support = x @ W, computed exactly once per batch.

    grid (B, row tiles, Fin tiles); acc_ref is an f32 accumulator over the Fin axis.
    """
    k = pl.program_id(2)

    @pl.when(k == 0)
    def _init():
        acc_ref[...] = jnp.zeros_like(acc_ref)

    acc_ref[...] += jnp.dot(x_ref[0], w_ref[...], preferred_element_type=jnp.float32)

    @pl.when(k == pl.num_programs(2) - 1)
    def _finalize():
        o_ref[0] = acc_ref[...].astype(o_ref.dtype)


def _adj_matmul_kernel(s_ref, adj_ref, b_ref, o_ref, acc_ref):
    """Large-graph stage 2: out = adj @ support + bias.

    grid (B, row tiles, K tiles); the adj tile (TM, TK) streams against the cached
    support; bias add + cast happen once per output tile (f32 epilogue).
    """
    k = pl.program_id(2)

    @pl.when(k == 0)
    def _init():
        acc_ref[...] = jnp.zeros_like(acc_ref)

    acc_ref[...] += jnp.dot(adj_ref[0], s_ref[0], preferred_element_type=jnp.float32)

    @pl.when(k == pl.num_programs(2) - 1)
    def _finalize():
        o_ref[0] = (acc_ref[...] + b_ref[0]).astype(o_ref.dtype)


# --------------------------------------------------------------------------- wrapper

@functools.partial(jax.jit, static_argnames=("compute_dtype",))
def graph_convolution(x, adj, weight, bias=None, *, compute_dtype=jnp.float32):
    """Pallas GCN layer forward: adj @ (x @ weight) [+ bias].

    x:      (B, N, Fin) or (N, Fin)
    adj:    (B, N, N) / (N, N), or the pre-padded output of prepare_adj()
    weight: (Fin, Fout)
    bias:   (1, 1, Fout) or None
    compute_dtype: jnp.float32 (default) or jnp.bfloat16.  bf16 halves the HBM bytes
        of the dominant adjacency stream and is valid on v5e, v6e and v7x (f32 MXU
        accumulation, f32 bias epilogue); expect ~1e-2 relative error.
    returns: (B, N, Fout) (or (N, Fout) for 2-D x), dtype of x.
    """
    squeeze_batch = x.ndim == 2
    if x.ndim == 2:
        x = x[None]
    if adj.ndim == 2:
        adj = adj[None]

    B, N, Fin = x.shape
    if adj.shape[0] == 1 and B > 1:
        adj = jnp.broadcast_to(adj, (B,) + adj.shape[1:])
    Fout = weight.shape[1]
    out_dtype = x.dtype
    csize = jnp.dtype(compute_dtype).itemsize
    osize = jnp.dtype(out_dtype).itemsize

    # Lane-dense padding of the feature dims (last dim -> 128-wide lane axis).
    Fin_p = _round_up(Fin, 128)
    Fout_p = _round_up(Fout, 128)
    budget = _vmem_budget_bytes()

    wp = _cast_pad(weight, compute_dtype, (Fin_p, Fout_p))
    if bias is None:
        bp = jnp.zeros((1, 1, Fout_p), jnp.float32)
    else:
        bp = _pad_to(bias.astype(jnp.float32).reshape(1, 1, Fout), (1, 1, Fout_p))

    # ---- path selection: whole graph in one VMEM tile vs. tiled two-stage ----------
    N_ps = _round_up(N, 128)       # lane-dense node padding for the fused path
    fused_need = (2 * (N_ps * Fin_p + N_ps * N_ps + Fin_p * Fout_p) * csize
                  + 2 * N_ps * Fout_p * osize
                  + 2 * N_ps * Fout_p * 4           # in-kernel f32 support / result
                  + 2 * Fout_p * 4)
    use_fused = (N_ps <= 1024) and (fused_need <= int(0.65 * budget))

    if use_fused:
        N_p = N_ps
        # On a 2-TensorCore chip give both cores a "parallel" grid unit even when a
        # single small graph is passed (Net calls gc1/gc2 with one graph).
        R = 2 if (B == 1 and _multi_tensorcore()) else 1
        TM = N_p // R

        xp = _cast_pad(x, compute_dtype, (B, N_p, Fin_p))
        adjp = _prep_adj(adj, N_p, compute_dtype)

        flops = 2 * B * R * N_p * Fin_p * Fout_p + 2 * B * N_p * N_p * Fout_p
        bytes_accessed = ((B * N_p * Fin_p + B * N_p * N_p + Fin_p * Fout_p) * csize
                          + Fout_p * 4 + B * N_p * Fout_p * osize)

        out = pl.pallas_call(
            _gcn_fused_kernel,
            out_shape=jax.ShapeDtypeStruct((B, N_p, Fout_p), out_dtype),
            grid_spec=pltpu.PrefetchScalarGridSpec(
                num_scalar_prefetch=0,
                grid=(B, R),
                in_specs=[
                    pl.BlockSpec((1, N_p, Fin_p), lambda b, i: (b, 0, 0)),
                    pl.BlockSpec((1, TM, N_p), lambda b, i: (b, i, 0)),
                    pl.BlockSpec((Fin_p, Fout_p), lambda b, i: (0, 0)),
                    pl.BlockSpec((1, 1, Fout_p), lambda b, i: (0, 0, 0)),
                ],
                out_specs=pl.BlockSpec((1, TM, Fout_p), lambda b, i: (b, i, 0)),
            ),
            compiler_params=pltpu.CompilerParams(
                dimension_semantics=("parallel", "parallel"),
                vmem_limit_bytes=_vmem_limit(fused_need, budget),
            ),
            cost_estimate=pl.CostEstimate(
                flops=flops, transcendentals=0, bytes_accessed=bytes_accessed),
        )(xp, adjp, wp, bp)

        out = out[:, :N, :Fout]
        if squeeze_batch:
            out = out[0]
        return out

    # ---- large-graph path: cache support = x @ W, then stream adj against it -------
    def _stage2_need(t):
        return (3 * t * t * csize               # adj (up to triple-buffered)
                + 2 * t * Fout_p * csize        # support tiles
                + 2 * t * Fout_p * osize        # output tiles
                + t * Fout_p * 4                # f32 accumulator
                + 2 * Fout_p * 4)

    TM = 512
    for cand in (2048, 1536, 1024):
        if _stage2_need(cand) <= int(0.65 * budget):
            TM = cand
            break
    TK = TM
    N_p = _round_up(N, TM)
    R = N_p // TM
    Kt = N_p // TK

    # Stage-1 reduction tile over Fin: largest power-of-two-ish divisor that fits.
    TKf = 128
    for cand in (2048, 1024, 512, 256, 128):
        if cand <= Fin_p and Fin_p % cand == 0:
            need1 = (2 * (TM * cand + cand * Fout_p) * csize
                     + 2 * TM * Fout_p * csize + TM * Fout_p * 4)
            if need1 <= int(0.65 * budget):
                TKf = cand
                break
    Ksf = Fin_p // TKf
    stage1_need = (2 * (TM * TKf + TKf * Fout_p) * csize
                   + 2 * TM * Fout_p * csize + TM * Fout_p * 4)

    xp = _cast_pad(x, compute_dtype, (B, N_p, Fin_p))
    adjp = _prep_adj(adj, N_p, compute_dtype)

    # Stage 1: support = x @ W, computed once (no R-fold recompute / x re-DMA).
    support = pl.pallas_call(
        _support_kernel,
        out_shape=jax.ShapeDtypeStruct((B, N_p, Fout_p), compute_dtype),
        grid_spec=pltpu.PrefetchScalarGridSpec(
            num_scalar_prefetch=0,
            grid=(B, R, Ksf),
            in_specs=[
                pl.BlockSpec((1, TM, TKf), lambda b, i, k: (b, i, k)),
                pl.BlockSpec((TKf, Fout_p), lambda b, i, k: (k, 0)),
            ],
            out_specs=pl.BlockSpec((1, TM, Fout_p), lambda b, i, k: (b, i, 0)),
            scratch_shapes=[pltpu.VMEM((TM, Fout_p), jnp.float32)],
        ),
        compiler_params=pltpu.CompilerParams(
            dimension_semantics=("parallel", "parallel", "arbitrary"),
            vmem_limit_bytes=_vmem_limit(stage1_need, budget),
        ),
        cost_estimate=pl.CostEstimate(
            flops=2 * B * N_p * Fin_p * Fout_p, transcendentals=0,
            bytes_accessed=(B * N_p * Fin_p * csize + Fin_p * Fout_p * csize
                            + B * N_p * Fout_p * csize)),
    )(xp, wp)

    # Stage 2: out = adj @ support + bias.  The adjacency is the dominant HBM stream:
    # give it one extra pipeline buffer when there is a K loop so prefetch is not
    # exposed at row-tile boundaries.
    adj_index = lambda b, i, k: (b, i, k)
    if Kt > 1:
        try:
            adj_spec = pl.BlockSpec((1, TM, TK), adj_index,
                                    pipeline_mode=pl.Buffered(3))
        except TypeError:
            adj_spec = pl.BlockSpec((1, TM, TK), adj_index)
    else:
        adj_spec = pl.BlockSpec((1, TM, TK), adj_index)

    out = pl.pallas_call(
        _adj_matmul_kernel,
        out_shape=jax.ShapeDtypeStruct((B, N_p, Fout_p), out_dtype),
        grid_spec=pltpu.PrefetchScalarGridSpec(
            num_scalar_prefetch=0,
            grid=(B, R, Kt),
            in_specs=[
                pl.BlockSpec((1, TK, Fout_p), lambda b, i, k: (b, k, 0)),
                adj_spec,
                pl.BlockSpec((1, 1, Fout_p), lambda b, i, k: (0, 0, 0)),
            ],
            out_specs=pl.BlockSpec((1, TM, Fout_p), lambda b, i, k: (b, i, 0)),
            scratch_shapes=[pltpu.VMEM((TM, Fout_p), jnp.float32)],
        ),
        compiler_params=pltpu.CompilerParams(
            dimension_semantics=("parallel", "parallel", "arbitrary"),
            vmem_limit_bytes=_vmem_limit(_stage2_need(TM), budget),
        ),
        cost_estimate=pl.CostEstimate(
            flops=2 * B * N_p * N_p * Fout_p, transcendentals=0,
            bytes_accessed=(B * N_p * N_p * csize
                            + B * R * N_p * Fout_p * csize   # support re-streamed per row tile
                            + Fout_p * 4
                            + B * N_p * Fout_p * osize)),
    )(support, adjp, bp)

    out = out[:, :N, :Fout]
    if squeeze_batch:
        out = out[0]
    return out


def init_gcn_params(key, in_features, out_features, bias=False):
    """Deterministic replica of GraphConvolution.reset_parameters."""
    stdv = 1.0 / math.sqrt(out_features)
    k_w, k_b = jax.random.split(key)
    weight = jax.random.uniform(
        k_w, (in_features, out_features), jnp.float32, minval=-stdv, maxval=stdv)
    if bias:
        b = jax.random.uniform(
            k_b, (1, 1, out_features), jnp.float32, minval=-stdv, maxval=stdv)
    else:
        b = None
    return weight, b


if __name__ == "__main__":
    root = jax.random.PRNGKey(0)
    k_x, k_adj, k_p, k_x2, k_adj2, k_p2, k_p3, _ = jax.random.split(root, 8)

    # --- batched, bias=False (module default), f32 compute ---
    B, N, F_IN, F_OUT = 2, 8, 32, 32
    x = jax.random.normal(k_x, (B, N, F_IN), jnp.float32)
    adj = jax.random.uniform(k_adj, (B, N, N), jnp.float32)
    w, _ = init_gcn_params(k_p, F_IN, F_OUT, bias=False)

    out = jax.block_until_ready(graph_convolution(x, adj, w))
    ref = jnp.einsum("bij,bjf->bif", adj, jnp.einsum("bnf,fo->bno", x, w))
    assert out.shape == (B, N, F_OUT)
    assert jnp.allclose(out, ref, atol=1e-4, rtol=1e-4)

    # --- bias=True path ---
    w2, b2 = init_gcn_params(k_p, F_IN, F_OUT, bias=True)
    out2 = jax.block_until_ready(graph_convolution(x, adj, w2, b2))
    ref2 = jnp.einsum("bij,bjf->bif", adj, jnp.einsum("bnf,fo->bno", x, w2)) + b2
    assert jnp.allclose(out2, ref2, atol=1e-4, rtol=1e-4)

    # --- single-graph 2-D inputs with unaligned dims; adjacency prepared once and
    #     reused across two stacked layers (gc1 -> LeakyReLU -> gc2), like Net's S ---
    N2, FI2, FH2, FO2 = 20, 48, 96, 64
    x2 = jax.random.normal(k_x2, (N2, FI2), jnp.float32)
    adj2 = jax.random.uniform(k_adj2, (N2, N2), jnp.float32)
    w3, b3 = init_gcn_params(k_p2, FI2, FH2, bias=True)
    w4, _ = init_gcn_params(k_p3, FH2, FO2, bias=False)

    adj_pre = prepare_adj(adj2)          # cast + pad the N^2 stream once, reuse below
    g1 = jax.block_until_ready(graph_convolution(x2, adj_pre, w3, b3))
    ref_g1 = adj2 @ (x2 @ w3) + b3[0]
    assert g1.shape == (N2, FH2)
    assert jnp.allclose(g1, ref_g1, atol=2e-3, rtol=2e-3)

    h = jax.nn.leaky_relu(g1, negative_slope=0.2)
    g2 = jax.block_until_ready(graph_convolution(h, adj_pre, w4))
    ref_g2 = adj2 @ (jax.nn.leaky_relu(ref_g1, negative_slope=0.2) @ w4)
    assert g2.shape == (N2, FO2)
    assert jnp.allclose(g2, ref_g2, atol=1e-2, rtol=1e-2)

    # --- bf16 compute path (valid on v5e/v6e/v7x): f32 MXU accumulation, loose tol ---
    out4 = jax.block_until_ready(
        graph_convolution(x, adj, w, compute_dtype=jnp.bfloat16))
    assert jnp.allclose(out4, ref, atol=2e-1, rtol=2e-1)

    print("KERNEL_OK")
</pallas_src>

<mosaic_0001>
module attributes {stable_mosaic.version = 11 : i64} {
  func.func @_gcn_fused_kernel(%arg0: i32, %arg1: i32, %arg2: memref<1x128x128xf32, #tpu.memory_space<vmem>>, %arg3: memref<1x128x128xf32, #tpu.memory_space<vmem>>, %arg4: memref<128x128xf32, #tpu.memory_space<vmem>>, %arg5: memref<1x1x128xf32, #tpu.memory_space<vmem>>, %arg6: memref<1x128x128xf32, #tpu.memory_space<vmem>>) attributes {dimension_semantics = [#tpu.dimension_semantics<parallel>, #tpu.dimension_semantics<parallel>], iteration_bounds = array<i64: 2, 1>, scalar_prefetch = 0 : i64, scratch_operands = 0 : i64, tpu.core_type = #tpu.core_type<tc>, window_params = [{transform_indices = @transform_0, window_bounds = array<i64: 1, 128, 128>}, {transform_indices = @transform_1, window_bounds = array<i64: 1, 128, 128>}, {pipeline_mode = #tpu.pipeline_mode<synchronous>, transform_indices = @transform_2, window_bounds = array<i64: 128, 128>}, {pipeline_mode = #tpu.pipeline_mode<synchronous>, transform_indices = @transform_3, window_bounds = array<i64: 1, 1, 128>}, {transform_indices = @transform_4, window_bounds = array<i64: 1, 128, 128>}]} {
    %c0 = arith.constant 0 : index
    %c0_0 = arith.constant 0 : index
    %c0_1 = arith.constant 0 : index
    %0 = vector.load %arg2[%c0, %c0_0, %c0_1] : memref<1x128x128xf32, #tpu.memory_space<vmem>>, vector<1x128x128xf32>
    %1 = vector.shape_cast %0 : vector<1x128x128xf32> to vector<128x128xf32>
    %c0_2 = arith.constant 0 : index
    %c0_3 = arith.constant 0 : index
    %2 = vector.load %arg4[%c0_2, %c0_3] : memref<128x128xf32, #tpu.memory_space<vmem>>, vector<128x128xf32>
    %cst = arith.constant dense<0.000000e+00> : vector<128x128xf32>
    %3 = tpu.matmul %1, %2, %cst {dimension_numbers = #tpu.dot_dimension_numbers<[1], [0], [0], [1], [0, 0, 1, 1], [], []>} : vector<128x128xf32>, vector<128x128xf32>, vector<128x128xf32> -> vector<128x128xf32>
    %c0_4 = arith.constant 0 : index
    %c0_5 = arith.constant 0 : index
    %c0_6 = arith.constant 0 : index
    %4 = vector.load %arg3[%c0_4, %c0_5, %c0_6] : memref<1x128x128xf32, #tpu.memory_space<vmem>>, vector<1x128x128xf32>
    %5 = vector.shape_cast %4 : vector<1x128x128xf32> to vector<128x128xf32>
    %cst_7 = arith.constant dense<0.000000e+00> : vector<128x128xf32>
    %6 = tpu.matmul %5, %3, %cst_7 {dimension_numbers = #tpu.dot_dimension_numbers<[1], [0], [0], [1], [0, 0, 1, 1], [], []>} : vector<128x128xf32>, vector<128x128xf32>, vector<128x128xf32> -> vector<128x128xf32>
    %c0_8 = arith.constant 0 : index
    %c0_9 = arith.constant 0 : index
    %c0_10 = arith.constant 0 : index
    %7 = vector.load %arg5[%c0_8, %c0_9, %c0_10] : memref<1x1x128xf32, #tpu.memory_space<vmem>>, vector<1x1x128xf32>
    %8 = vector.shape_cast %7 : vector<1x1x128xf32> to vector<1x128xf32>
    %9 = vector.broadcast %8 : vector<1x128xf32> to vector<128x128xf32>
    %10 = arith.addf %6, %9 : vector<128x128xf32>
    %c0_11 = arith.constant 0 : index
    %c0_12 = arith.constant 0 : index
    %c0_13 = arith.constant 0 : index
    %11 = vector.load %arg6[%c0_11, %c0_12, %c0_13] : memref<1x128x128xf32, #tpu.memory_space<vmem>>, vector<1x128x128xf32>
    %12 = vector.shape_cast %11 : vector<1x128x128xf32> to vector<128x128xf32>
    %13 = vector.shape_cast %10 : vector<128x128xf32> to vector<1x128x128xf32>
    tpu.vector_store %arg6[%c0_11, %c0_12, %c0_13], %13 {strides = array<i32>} : memref<1x128x128xf32, #tpu.memory_space<vmem>>, vector<1x128x128xf32>,
    return
  }
  func.func @transform_0(%arg0: i32, %arg1: i32) -> (i32, i32, i32) {
    %c0_i32 = arith.constant 0 : i32
    %c0_i32_0 = arith.constant 0 : i32
    %c0_i32_1 = arith.constant 0 : i32
    return %arg0, %c0_i32, %c0_i32_0 : i32, i32, i32
  }
  func.func @transform_1(%arg0: i32, %arg1: i32) -> (i32, i32, i32) {
    %c0_i32 = arith.constant 0 : i32
    %c0_i32_0 = arith.constant 0 : i32
    return %arg0, %arg1, %c0_i32 : i32, i32, i32
  }
  func.func @transform_2(%arg0: i32, %arg1: i32) -> (i32, i32) {
    %c0_i32 = arith.constant 0 : i32
    %c0_i32_0 = arith.constant 0 : i32
    %c0_i32_1 = arith.constant 0 : i32
    return %c0_i32, %c0_i32_0 : i32, i32
  }
  func.func @transform_3(%arg0: i32, %arg1: i32) -> (i32, i32, i32) {
    %c0_i32 = arith.constant 0 : i32
    %c0_i32_0 = arith.constant 0 : i32
    %c0_i32_1 = arith.constant 0 : i32
    %c0_i32_2 = arith.constant 0 : i32
    return %c0_i32, %c0_i32_0, %c0_i32_1 : i32, i32, i32
  }
  func.func @transform_4(%arg0: i32, %arg1: i32) -> (i32, i32, i32) {
    %c0_i32 = arith.constant 0 : i32
    %c0_i32_0 = arith.constant 0 : i32
    return %arg0, %arg1, %c0_i32 : i32, i32, i32
  }
}

</mosaic_0001>

<bundles_post_ra>
// kernel: graph_convolution.1
= control target key start
LH: loop header
LB: loop body
LE: loop exit
PB: predicated region body
PF: predicated region fallthrough
CT: control target
= control target key end

     0   :  { %s1047_s15 = smov 0   ;;  %s1049_s16 = smov 0   ;;  %s1193_s0 = inlined_call_operand.vmem [shape: f32[2,128,128], index: 0, kind: input, shape index: {}]   ;;  %s1194_s1 = inlined_call_operand.vmem [shape: f32[2,128,128], index: 1, kind: input, shape index: {}]   ;;  %s1195_s2 = inlined_call_operand.vmem [shape: f32[128,128], index: 2, kind: input, shape index: {}]   ;;  %s1196_s3 = inlined_call_operand.vmem [shape: f32[1,1,128], index: 3, kind: input, shape index: {}]   ;;  %s1197_s4 = inlined_call_operand.vmem [shape: f32[2,128,128], index: 4, kind: output, shape index: {}]  }
   0x1   :  { %s1051_s17 = smov 0  }
   0x2 LB: > { %s26_s18 = sadd.s32 1, %s1016_s16  ;;  %p721_p0 = scmp.ge.s32.totalorder %s1020_s17, 1  ;;  %s1020_s17 = sphi %s1051_s17, %s14_s17   ;;  %s1016_s16 = sphi %s1049_s16, %s1199_s16   ;;  %s1012_s15 = sphi %s1047_s15, %s1198_s15  }
   0x3   : > { %p28_p1 = scmp.ge.s32.totalorder %s26_s18, 2  ;;  %p193_p2 = scmp.lt.s32.totalorder %s1020_s17, 3 }
   0x5   : > { %s1201_s18 = smov (%p28_p1, %s26_s18), 0  ;;  %p194_p3 = pnand %p721_p0, %p193_p2 }
   0x6   : > { %v273_v0 = vld [vmem:[%s1195_s2] sm:$0xff] (!%p194_p3)  ;;  %v274_v1 = vld [vmem:[%s1195_s2 + $0x8] sm:$0xff] (!%p194_p3)  ;;  %v275_v2 = vld [vmem:[%s1195_s2 + $0x10] sm:$0xff] (!%p194_p3)  ;;  %p232_p4 = scmp.lt.s32.totalorder (!%p194_p3), %s1012_s15, 1 }
   0x7   : > { %197 = sbr.rel (%p194_p3) target bundleno = 532 (0x214), region = 36  ;;  %v910_v3 = vpack.c.bf16 (!%p194_p3), %v274_v1, %v273_v0  ;;  %v276_v4 = vld [vmem:[%s1195_s2 + $0x18] sm:$0xff] (!%p194_p3)  ;;  %v277_v6 = vld [vmem:[%s1195_s2 + $0x20] sm:$0xff] (!%p194_p3)  ;;  %v278_v7 = vld [vmem:[%s1195_s2 + $0x28] sm:$0xff] (!%p194_p3) }
   0x8   : > { %v914_v5 = vpack.c.bf16 (!%p194_p3), %v276_v4, %v275_v2  ;;  %v918_v8 = vpack.c.bf16 (!%p194_p3), %v278_v7, %v277_v6  ;;  %v279_v9 = vld [vmem:[%s1195_s2 + $0x30] sm:$0xff] (!%p194_p3)  ;;  %v280_v10 = vld [vmem:[%s1195_s2 + $0x38] sm:$0xff] (!%p194_p3)  ;;  %v281_v13 = vld [vmem:[%s1195_s2 + $0x40] sm:$0xff] (!%p194_p3) }
   0x9   : > { %911 = vmatprep.subr.bf16.mxu0 (!%p194_p3), %v910_v3  ;;  %v922_v12 = vpack.c.bf16 (!%p194_p3), %v280_v10, %v279_v9  ;;  %v282_v14 = vld [vmem:[%s1195_s2 + $0x48] sm:$0xff] (!%p194_p3)  ;;  %v283_v16 = vld [vmem:[%s1195_s2 + $0x50] sm:$0xff] (!%p194_p3)  ;;  %v284_v17 = vld [vmem:[%s1195_s2 + $0x58] sm:$0xff] (!%p194_p3) }
   0xa   : > { %913 = vmatpush3.bf16.msra.mxu0 (!%p194_p3), %v910_v3  ;;  %v926_v15 = vpack.c.bf16 (!%p194_p3), %v282_v14, %v281_v13  ;;  %v930_v18 = vpack.c.bf16 (!%p194_p3), %v284_v17, %v283_v16  ;;  %v285_v19 = vld [vmem:[%s1195_s2 + $0x60] sm:$0xff] (!%p194_p3)  ;;  %v286_v20 = vld [vmem:[%s1195_s2 + $0x68] sm:$0xff] (!%p194_p3)  ;;  %v287_v22 = vld [vmem:[%s1195_s2 + $0x70] sm:$0xff] (!%p194_p3) }
   0xb   : > { %915 = vmatprep.subr.bf16.mxu0 (!%p194_p3), %v914_v5  ;;  %v934_v21 = vpack.c.bf16 (!%p194_p3), %v286_v20, %v285_v19  ;;  %v288_v23 = vld [vmem:[%s1195_s2 + $0x78] sm:$0xff] (!%p194_p3)  ;;  %v728_v16 = vld [vmem:[%s1196_s3] ss:$0 sm:$0xff] (!%p194_p3) }
   0xc   : > { %v938_v24 = vpack.c.bf16 (!%p194_p3), %v288_v23, %v287_v22 }
   0xe   : > { %s1203_s15 = smov (!%p232_p4, %s1012_s15), 1  ;;  %917 = vmatpush3.bf16.msra.mxu0 %v914_v5 }
   0xf   : > { %s1083_s5 = sshll.u32 %s1203_s15, 7  ;;  %919 = vmatprep.subr.bf16.mxu0 %v918_v8 }
  0x10   : > { %s1089_s8 = scalar_lea.vmem %s1193_s0, %s1083_s5  ;;  %s1141_s10 = scalar_lea.vmem %s1194_s1, %s1083_s5 }
  0x11   : > { %v257_v11 = vld [vmem:[%s1089_s8] sm:$0xff]  ;;  %v258_v25 = vld [vmem:[%s1089_s8 + $0x8] sm:$0xff]  ;;  %v259_v26 = vld [vmem:[%s1089_s8 + $0x10] sm:$0xff]  ;;  %s1166_s14 = scalar_lea.vmem %s1197_s4, %s1083_s5 }
  0x12   : > { %830 = vmatprep.mubr.f32.mxu0 %v257_v11  ;;  %921 = vmatpush3.bf16.msra.mxu0 %v918_v8  ;;  %v260_v27 = vld [vmem:[%s1089_s8 + $0x18] sm:$0xff]  ;;  %v261_v28 = vld [vmem:[%s1089_s8 + $0x20] sm:$0xff]  ;;  %v262_v29 = vld [vmem:[%s1089_s8 + $0x28] sm:$0xff] }
  0x13   : > { %923 = vmatprep.subr.bf16.mxu0 %v922_v12  ;;  %v263_v30 = vld [vmem:[%s1089_s8 + $0x30] sm:$0xff]  ;;  %v264_v31 = vld [vmem:[%s1089_s8 + $0x38] sm:$0xff]  ;;  %v265_v32 = vld [vmem:[%s1089_s8 + $0x40] sm:$0xff] }
  0x14   : > { %v266_v33 = vld [vmem:[%s1089_s8 + $0x48] sm:$0xff]  ;;  %v267_v34 = vld [vmem:[%s1089_s8 + $0x50] sm:$0xff]  ;;  %v268_v35 = vld [vmem:[%s1089_s8 + $0x58] sm:$0xff] }
  0x15   : > { %v269_v36 = vld [vmem:[%s1089_s8 + $0x60] sm:$0xff]  ;;  %v270_v37 = vld [vmem:[%s1089_s8 + $0x68] sm:$0xff]  ;;  %v271_v38 = vld [vmem:[%s1089_s8 + $0x70] sm:$0xff] }
  0x16   : > { %925 = vmatpush3.bf16.msra.mxu0 %v922_v12  ;;  %v272_v39 = vld [vmem:[%s1089_s8 + $0x78] sm:$0xff]  ;;  %v434_v40 = vld [vmem:[%s1141_s10] sm:$0xff]  ;;  %v435_v1 = vld [vmem:[%s1141_s10 + $0x8] sm:$0xff] }
  0x17   : > { %927 = vmatprep.subr.bf16.mxu0 %v926_v15  ;;  %886 = vmatprep.mubr.f32.mxu1 %v434_v40  ;;  %v436_v2 = vld [vmem:[%s1141_s10 + $0x10] sm:$0xff]  ;;  %v437_v3 = vld [vmem:[%s1141_s10 + $0x18] sm:$0xff]  ;;  %v438_v4 = vld [vmem:[%s1141_s10 + $0x20] sm:$0xff] }
  0x18   : > { %v439_v5 = vld [vmem:[%s1141_s10 + $0x28] sm:$0xff]  ;;  %v440_v6 = vld [vmem:[%s1141_s10 + $0x30] sm:$0xff]  ;;  %v441_v7 = vld [vmem:[%s1141_s10 + $0x38] sm:$0xff] }
  0x19   : > { %v442_v8 = vld [vmem:[%s1141_s10 + $0x40] sm:$0xff]  ;;  %v443_v9 = vld [vmem:[%s1141_s10 + $0x48] sm:$0xff]  ;;  %v444_v10 = vld [vmem:[%s1141_s10 + $0x50] sm:$0xff] }
  0x1a   : > { %929 = vmatpush3.bf16.msra.mxu0 %v926_v15  ;;  %v445_v11 = vld [vmem:[%s1141_s10 + $0x58] sm:$0xff]  ;;  %v446_v12 = vld [vmem:[%s1141_s10 + $0x60] sm:$0xff]  ;;  %v447_v13 = vld [vmem:[%s1141_s10 + $0x68] sm:$0xff] }
  0x1b   : > { %931 = vmatprep.subr.bf16.mxu0 %v930_v18  ;;  %v448_v14 = vld [vmem:[%s1141_s10 + $0x70] sm:$0xff]  ;;  %v449_v15 = vld [vmem:[%s1141_s10 + $0x78] sm:$0xff] }
  0x1e   : > { %933 = vmatpush3.bf16.msra.mxu0 %v930_v18 }
  0x1f   : > { %935 = vmatprep.subr.bf16.mxu0 %v934_v21 }
  0x22   : > { %937 = vmatpush3.bf16.msra.mxu0 %v934_v21 }
  0x23   : > { %939 = vmatprep.subr.bf16.mxu0 %v938_v24 }
  0x26   : > { %941 = vmatpush3.bf16.msra.mxu0 %v938_v24 }
  0x29   : > { %831 = vmatmul.mubr.f32.vlgmr.msra.gmra.mrb[0].mxu0 %v258_v25 }
  0x2a   : > { %833 = vmatprep.mubr.f32.mxu0 %v259_v26 }
  0x2d   : > { %834 = vmatmul.mubr.f32.gmra.mrb[2].mxu0 %v260_v27 }
  0x2e   : > { %836 = vmatprep.mubr.f32.mxu0 %v261_v28 }
  0x31   : > { %837 = vmatmul.mubr.f32.gmra.mrb[4].mxu0 %v262_v29 }
  0x32   : > { %839 = vmatprep.mubr.f32.mxu0 %v263_v30 }
  0x35   : > { %840 = vmatmul.mubr.f32.gmra.mrb[6].mxu0 %v264_v31 }
  0x36   : > { %842 = vmatprep.mubr.f32.mxu0 %v265_v32 }
  0x39   : > { %843 = vmatmul.mubr.f32.gmra.mrb[8].mxu0 %v266_v33 }
  0x3a   : > { %845 = vmatprep.mubr.f32.mxu0 %v267_v34 }
  0x3d   : > { %846 = vmatmul.mubr.f32.gmra.mrb[10].mxu0 %v268_v35 }
  0x3e   : > { %848 = vmatprep.mubr.f32.mxu0 %v269_v36 }
  0x41   : > { %849 = vmatmul.mubr.f32.gmra.mrb[12].mxu0 %v270_v37 }
  0x42   : > { %851 = vmatprep.mubr.f32.mxu0 %v271_v38 }
  0x45   : > { %852 = vmatmul.mubr.f32.gmra.mrb[14].mxu0 %v272_v39 }
  0xfc   : > { %v832_v41 = vpop.f32.mrb[0].mxu0 }
  0xfd   : > { %v355_v42 = vpop.f32.mrb[1].mxu0 }
  0xfe   : > { %v942_v43 = vpack.c.bf16 %v832_v41, %v355_v42 }
 0x100   : > { %v835_v44 = vpop.f32.mrb[2].mxu0  ;;  %943 = vmatprep.subr.bf16.mxu1 %v942_v43 }
 0x101   : > { %v365_v45 = vpop.f32.mrb[3].mxu0  ;;  %945 = vmatpush3.bf16.msra.mxu1 %v942_v43 }
 0x102   : > { %v946_v46 = vpack.c.bf16 %v835_v44, %v365_v45 }
 0x104   : > { %v838_v47 = vpop.f32.mrb[4].mxu0  ;;  %947 = vmatprep.subr.bf16.mxu1 %v946_v46 }
 0x105   : > { %v375_v48 = vpop.f32.mrb[5].mxu0  ;;  %949 = vmatpush3.bf16.msra.mxu1 %v946_v46 }
 0x106   : > { %v950_v49 = vpack.c.bf16 %v838_v47, %v375_v48 }
 0x108   : > { %v841_v50 = vpop.f32.mrb[6].mxu0  ;;  %951 = vmatprep.subr.bf16.mxu1 %v950_v49 }
 0x109   : > { %v385_v51 = vpop.f32.mrb[7].mxu0  ;;  %953 = vmatpush3.bf16.msra.mxu1 %v950_v49 }
 0x10a   : > { %v954_v52 = vpack.c.bf16 %v841_v50, %v385_v51 }
 0x10c   : > { %v844_v53 = vpop.f32.mrb[8].mxu0  ;;  %955 = vmatprep.subr.bf16.mxu1 %v954_v52 }
 0x10d   : > { %v395_v54 = vpop.f32.mrb[9].mxu0  ;;  %957 = vmatpush3.bf16.msra.mxu1 %v954_v52 }
 0x10e   : > { %v958_v55 = vpack.c.bf16 %v844_v53, %v395_v54 }
 0x110   : > { %v847_v56 = vpop.f32.mrb[10].mxu0  ;;  %959 = vmatprep.subr.bf16.mxu1 %v958_v55 }
 0x111   : > { %v405_v57 = vpop.f32.mrb[11].mxu0  ;;  %961 = vmatpush3.bf16.msra.mxu1 %v958_v55 }
 0x112   : > { %v962_v58 = vpack.c.bf16 %v847_v56, %v405_v57 }
 0x114   : > { %v850_v59 = vpop.f32.mrb[12].mxu0  ;;  %963 = vmatprep.subr.bf16.mxu1 %v962_v58 }
 0x115   : > { %v415_v60 = vpop.f32.mrb[13].mxu0  ;;  %965 = vmatpush3.bf16.msra.mxu1 %v962_v58 }
 0x116   : > { %v966_v61 = vpack.c.bf16 %v850_v59, %v415_v60 }
 0x118   : > { %v853_v62 = vpop.f32.mrb[14].mxu0  ;;  %967 = vmatprep.subr.bf16.mxu1 %v966_v61 }
 0x119   : > { %v425_v63 = vpop.f32.mrb[15].mxu0  ;;  %969 = vmatpush3.bf16.msra.mxu1 %v966_v61 }
 0x11a   : > { %v970_v0 = vpack.c.bf16 %v853_v62, %v425_v63 }
 0x11c   : > { %971 = vmatprep.subr.bf16.mxu1 %v970_v0 }
 0x11d   : > { %973 = vmatpush3.bf16.msra.mxu1 %v970_v0 }
 0x120   : > { %887 = vmatmul.mubr.f32.vlgmr.msra.gmra.mrb[0].mxu1 %v435_v1 }
 0x121   : > { %889 = vmatprep.mubr.f32.mxu1 %v436_v2 }
 0x124   : > { %890 = vmatmul.mubr.f32.gmra.mrb[2].mxu1 %v437_v3 }
 0x125   : > { %892 = vmatprep.mubr.f32.mxu1 %v438_v4 }
 0x128   : > { %893 = vmatmul.mubr.f32.gmra.mrb[4].mxu1 %v439_v5 }
 0x129   : > { %895 = vmatprep.mubr.f32.mxu1 %v440_v6 }
 0x12c   : > { %896 = vmatmul.mubr.f32.gmra.mrb[6].mxu1 %v441_v7 }
 0x12d   : > { %898 = vmatprep.mubr.f32.mxu1 %v442_v8 }
 0x130   : > { %899 = vmatmul.mubr.f32.gmra.mrb[8].mxu1 %v443_v9 }
 0x131   : > { %901 = vmatprep.mubr.f32.mxu1 %v444_v10 }
 0x134   : > { %902 = vmatmul.mubr.f32.gmra.mrb[10].mxu1 %v445_v11 }
 0x135   : > { %904 = vmatprep.mubr.f32.mxu1 %v446_v12 }
 0x138   : > { %905 = vmatmul.mubr.f32.gmra.mrb[12].mxu1 %v447_v13 }
 0x139   : > { %907 = vmatprep.mubr.f32.mxu1 %v448_v14 }
 0x13c   : > { %908 = vmatmul.mubr.f32.gmra.mrb[14].mxu1 %v449_v15 }
 0x1f3   : > { %v888_v17 = vpop.f32.mrb[0].mxu1 }
 0x1f4   : > { %v529_v18 = vadd.f32 %v888_v17, %v728_v16  ;;  %v523_v19 = vpop.f32.mrb[1].mxu1 }
 0x1f5   : > { %v524_v20 = vadd.f32 %v728_v16, %v523_v19 }
 0x1f6   : > { %603 = vst [vmem:[%s1166_s14 + $0x8] sm:$0xff] %v529_v18 }
 0x1f7   : > { %602 = vst [vmem:[%s1166_s14] sm:$0xff] %v524_v20  ;;  %v891_v21 = vpop.f32.mrb[2].mxu1 }
 0x1f8   : > { %v539_v22 = vadd.f32 %v891_v21, %v728_v16  ;;  %v533_v23 = vpop.f32.mrb[3].mxu1 }
 0x1f9   : > { %v534_v24 = vadd.f32 %v728_v16, %v533_v23 }
 0x1fa   : > { %605 = vst [vmem:[%s1166_s14 + $0x18] sm:$0xff] %v539_v22 }
 0x1fb   : > { %604 = vst [vmem:[%s1166_s14 + $0x10] sm:$0xff] %v534_v24  ;;  %v894_v25 = vpop.f32.mrb[4].mxu1 }
 0x1fc   : > { %v549_v26 = vadd.f32 %v894_v25, %v728_v16  ;;  %v543_v27 = vpop.f32.mrb[5].mxu1 }
 0x1fd   : > { %v544_v28 = vadd.f32 %v728_v16, %v543_v27 }
 0x1fe   : > { %607 = vst [vmem:[%s1166_s14 + $0x28] sm:$0xff] %v549_v26 }
 0x1ff   : > { %606 = vst [vmem:[%s1166_s14 + $0x20] sm:$0xff] %v544_v28  ;;  %v897_v29 = vpop.f32.mrb[6].mxu1 }
 0x200   : > { %v559_v30 = vadd.f32 %v897_v29, %v728_v16  ;;  %v553_v31 = vpop.f32.mrb[7].mxu1 }
 0x201   : > { %v554_v32 = vadd.f32 %v728_v16, %v553_v31 }
 0x202   : > { %609 = vst [vmem:[%s1166_s14 + $0x38] sm:$0xff] %v559_v30 }
 0x203   : > { %608 = vst [vmem:[%s1166_s14 + $0x30] sm:$0xff] %v554_v32  ;;  %v900_v33 = vpop.f32.mrb[8].mxu1 }
 0x204   : > { %v569_v34 = vadd.f32 %v900_v33, %v728_v16  ;;  %v563_v35 = vpop.f32.mrb[9].mxu1 }
 0x205   : > { %v564_v36 = vadd.f32 %v728_v16, %v563_v35 }
 0x206   : > { %611 = vst [vmem:[%s1166_s14 + $0x48] sm:$0xff] %v569_v34 }
 0x207   : > { %610 = vst [vmem:[%s1166_s14 + $0x40] sm:$0xff] %v564_v36  ;;  %v903_v37 = vpop.f32.mrb[10].mxu1 }
 0x208   : > { %v579_v38 = vadd.f32 %v903_v37, %v728_v16  ;;  %v573_v39 = vpop.f32.mrb[11].mxu1 }
 0x209   : > { %v574_v40 = vadd.f32 %v728_v16, %v573_v39 }
 0x20a   : > { %613 = vst [vmem:[%s1166_s14 + $0x58] sm:$0xff] %v579_v38 }
 0x20b   : > { %612 = vst [vmem:[%s1166_s14 + $0x50] sm:$0xff] %v574_v40  ;;  %v906_v41 = vpop.f32.mrb[12].mxu1 }
 0x20c   : > { %v589_v42 = vadd.f32 %v906_v41, %v728_v16  ;;  %v583_v43 = vpop.f32.mrb[13].mxu1 }
 0x20d   : > { %v584_v44 = vadd.f32 %v728_v16, %v583_v43 }
 0x20e   : > { %615 = vst [vmem:[%s1166_s14 + $0x68] sm:$0xff] %v589_v42 }
 0x20f   : > { %614 = vst [vmem:[%s1166_s14 + $0x60] sm:$0xff] %v584_v44  ;;  %v909_v45 = vpop.f32.mrb[14].mxu1 }
 0x210   : > { %v599_v46 = vadd.f32 %v909_v45, %v728_v16  ;;  %v593_v47 = vpop.f32.mrb[15].mxu1 }
 0x211   : > { %v594_v48 = vadd.f32 %v728_v16, %v593_v47 }
 0x212   : > { %617 = vst [vmem:[%s1166_s14 + $0x78] sm:$0xff] %v599_v46 }
 0x213   : > { %616 = vst [vmem:[%s1166_s14 + $0x70] sm:$0xff] %v594_v48 }
 0x214 PF: > { %s14_s17 = sadd.s32 1, %s1020_s17   ;;  %s1198_s15 = smov %s1016_s16 }
 0x215   : > { %p11_p5 = scmp.ge.s32.totalorder %s14_s17, 4   ;;  %s1199_s16 = smov %s1201_s18 }
 0x217   :  { %13 = sbr.rel (!%p11_p5) target bundleno = 2 (0x2), region = 69 }

</bundles_post_ra>
